<compile_context>
chip_gen: v5e
topology: v5e:2x2
jax: 0.10.0
libtpu: 0.0.40
codegen_flags: <defaults>
</compile_context>

<pallas_src>
import functools

import jax
import jax.numpy as jnp
from jax.experimental import pallas as pl
from jax.experimental.pallas import tpu as pltpu

_BN_EPS = 1e-5  # torch.nn.BatchNorm1d default


def _cdiv(a, b):
    return -(-a // b)


def _round_up(x, m):
    return _cdiv(x, m) * m


# ----------------------------------------------------------------------------
# Glue (plain JAX): feature construction = base_model_utils.orientation_feature_vector_v2
# Built neighbor-major (B, Nn, N, F) so the kernel's slab-sum pooling layout needs
# NO wrapper-side transpose of the big feature tensor.
# TODO(synk): exact orientation_feature_vector_v2 is external to the module; this is a
#             faithful-in-spirit reconstruction (PBC separation, 1/R, axis projections,
#             relative-orientation matrix) giving in_dim = 19 and R of shape (B,Nn,N,1).
# ----------------------------------------------------------------------------
def orientation_feature_vector_v2(position, orientation_R, neighbor_list, box_len):
    # position: (B, N, 3), orientation_R: (B, N, 3, 3), neighbor_list: (B, N, Nn) int32
    nl_t = jnp.swapaxes(neighbor_list, 1, 2)                          # (B, Nn, N) tiny int transpose
    nbr_pos = jax.vmap(lambda p, idx: p[idx])(position, nl_t)         # (B, Nn, N, 3)
    nbr_rot = jax.vmap(lambda r, idx: r[idx])(orientation_R, nl_t)    # (B, Nn, N, 3, 3)

    dr = nbr_pos - position[:, None, :, :]
    dr = dr - box_len * jnp.round(dr / box_len)                       # minimum-image PBC
    R = jnp.linalg.norm(dr, axis=-1, keepdims=True)                   # (B, Nn, N, 1)
    dr_hat = dr / R
    inv_r = 1.0 / R

    p_rot = jnp.broadcast_to(orientation_R[:, None, :, :, :], nbr_rot.shape)
    dr_p = jnp.einsum("bknj,bknja->bkna", dr_hat, p_rot)              # proj. onto particle axes
    dr_n = jnp.einsum("bknj,bknja->bkna", dr_hat, nbr_rot)            # proj. onto neighbor axes
    rel = jnp.einsum("bknja,bknjc->bknac", p_rot, nbr_rot)            # relative orientation (3,3)

    B, Nn, N = dr.shape[:3]
    features = jnp.concatenate(
        [dr_hat, inv_r, dr_p, dr_n, rel.reshape(B, Nn, N, 9)], axis=-1
    )                                                                 # (B, Nn, N, 19)
    return features, R


# ----------------------------------------------------------------------------
# Pallas kernel: one batch block (Bb elements) per grid step.
# Feature rows are ordered (b, neighbor_k, particle_n) so the neighbor mean-pool
# is a slab tree-sum (no pooling matmul, no relayout).  Every layer runs at the
# uniform padded width Wk; padded columns are exactly zero throughout.
# ----------------------------------------------------------------------------
def _energy_kernel(n_hidden, Bb, N, Nn, Wk, feat_ref, w_ref, b_ref, out_ref):
    NN = Nn * N
    biases = b_ref[...]                       # (n_w, Wk) f32 — tiny, stays resident
    counter = [0]

    def layer(x, act):
        i = counter[0]
        counter[0] += 1
        w = w_ref[i]                          # (Wk, Wk) bf16 (BN pre-folded)
        h = jnp.dot(x.astype(w.dtype), w, preferred_element_type=jnp.float32)
        h = h + biases[i:i + 1]
        if act == "relu":
            h = jnp.maximum(h, 0.0)
        elif act == "tanh":
            h = jnp.tanh(h)
        return h

    # ---- neighbors_net MLP on all Bb*NN pairs at once (bf16 MXU, f32 accum) ----
    # TODO(synk): lane-density repack of the 32-wide activations (4 groups / vreg) is
    #             intentionally NOT applied — only worth it if a bundle dump shows the
    #             VALU / vector-load slot binding rather than DMA/MXU.
    x = feat_ref[...].reshape(Bb * NN, Wk)
    h = layer(x, "relu")                      # Linear(in,H) + ReLU
    for _ in range(n_hidden):                 # Linear + BN(folded) + ReLU + Dropout(id)
        h = layer(h, "relu")
    h = layer(h, None)                        # final Linear(H,H), no activation

    # ---- pool_neighbors(..., 'mean'): pairwise tree sum over neighbor slabs ----
    h4 = h.reshape(Bb, Nn, N, Wk)
    parts = [h4[:, k] for k in range(Nn)]
    while len(parts) > 1:
        nxt = [a + b for a, b in zip(parts[0::2], parts[1::2])]
        if len(parts) % 2:
            nxt.append(parts[-1])
        parts = nxt
    z = parts[0] * (1.0 / Nn)                 # (Bb, N, Wk) f32

    # ---- DTanh phi (pool='max1'): 3x (PermEqui1_max -> tanh) ----
    for _ in range(3):
        zm = jnp.max(z, axis=1, keepdims=True)          # max over particles
        zc = (z - zm).reshape(Bb * N, Wk)
        z = layer(zc, "tanh").reshape(Bb, N, Wk)

    zmax = jnp.max(z, axis=1)                 # (Bb, Wk)

    # ---- rho head: Dropout(id) -> Linear -> tanh -> Dropout(id) -> Linear(->1) ----
    y = layer(zmax, "tanh")
    e = layer(y, None)                        # (Bb, Wk); column 0 holds the energy

    out_ref[0] = e[:, 0:1].T                  # lane-dense (1, Bb) store


# ----------------------------------------------------------------------------
# Wrapper: feature construction, BN folding, uniform-width packing, batch blocking.
# ----------------------------------------------------------------------------
def _vmem_capacity_bytes():
    try:
        info = pltpu.get_tpu_info()
        cap = getattr(info, "vmem_capacity_bytes", None)
        if cap:
            return int(cap)
    except Exception:
        pass
    return 64 * 1024 * 1024  # conservative default (v7x per-TensorCore)


def _device_kind():
    try:
        return jax.devices()[0].device_kind.lower()
    except Exception:
        return ""


def energy_predictor_forward(
    position,
    orientation_R,
    neighbor_list,
    params,
    *,
    box_len,
    n_layers,
    prior_energy_sigma=1.0,
    prior_energy_n=12,
    batch_block=None,
    feature_buffers=None,
):
    features, R = orientation_feature_vector_v2(
        position, orientation_R, neighbor_list, box_len
    )
    B, Nn, N, F = features.shape
    NN = Nn * N
    n_hidden = n_layers - 1

    # ---- fold eval-mode BatchNorm into the preceding Linear; collect (w, b) list ----
    it = iter(params)
    nxt = lambda: next(it)
    weights, biases = [], []

    w0, b0 = nxt(), nxt()
    weights.append(w0); biases.append(b0)
    for _ in range(n_hidden):
        w, b = nxt(), nxt()
        gamma, beta, mu, var = nxt(), nxt(), nxt(), nxt()
        scale = gamma * jax.lax.rsqrt(var + _BN_EPS)      # (1, H)
        weights.append(w * scale)
        biases.append((b - mu) * scale + beta)
    wl, bl = nxt(), nxt()
    weights.append(wl); biases.append(bl)
    for _ in range(3):                                    # DTanh phi Gammas
        gw, gb = nxt(), nxt()
        weights.append(gw); biases.append(gb)
    wr1, br1 = nxt(), nxt()
    weights.append(wr1); biases.append(br1)
    wr2, br2 = nxt(), nxt()
    weights.append(wr2); biases.append(br2)
    assert len(weights) == len(biases)

    H = w0.shape[1]
    D = wr1.shape[1]
    Wk = _round_up(max(F, H, D), 8)           # uniform padded layer width
    n_w = len(weights)

    # ---- pack all weights / biases at the uniform width (zero pad stays zero) ----
    def pad_w(w):
        return jnp.pad(w, ((0, Wk - w.shape[0]), (0, Wk - w.shape[1])))

    def pad_b(b):
        return jnp.pad(b, ((0, 0), (0, Wk - b.shape[1])))

    weight_pack = jnp.stack([pad_w(w) for w in weights]).astype(jnp.bfloat16)        # (n_w, Wk, Wk)
    bias_pack = jnp.concatenate([pad_b(b) for b in biases], axis=0).astype(jnp.float32)  # (n_w, Wk)

    # ---- feature tile: already neighbor-major; pad F -> Wk and cast in the producer ----
    feat = jnp.pad(features, ((0, 0), (0, 0), (0, 0), (0, Wk - F))).astype(jnp.bfloat16)
    feat = feat.reshape(B, NN, Wk)

    # ---- generation-aware VMEM budget & batch blocking ----
    kind = _device_kind()
    if feature_buffers is None:
        # deeper feature pipelining where HBM BW is lowest (v5-class chips)
        feature_buffers = 3 if "v5" in kind else 2
    feature_buffers = int(feature_buffers)

    vmem_cap = _vmem_capacity_bytes()
    vmem_limit = max(32 * 1024 * 1024, min((vmem_cap * 3) // 4, 112 * 1024 * 1024))
    if "v7" in kind:
        vmem_limit = min(vmem_limit, 48 * 1024 * 1024)    # 64 MiB physical per TC

    LANE = 128
    Lw = _round_up(Wk, LANE)
    fixed_bytes = 2 * (n_w * Wk * Lw * 2)                 # weight pack (worst case: 2 buffers)
    fixed_bytes += 2 * (_round_up(n_w, 8) * Lw * 4)       # bias pack
    fixed_bytes += 4 * 1024 * 1024                        # outputs + compiler temporaries slack
    # per batch element: lane-padded feature buffers + live f32/bf16 activation set
    per_elem = feature_buffers * NN * Lw * 2              # bf16 feature tile x buffers
    per_elem += NN * Lw * 12                              # f32 acts, bf16 copies, pool slabs
    budget = max(vmem_limit - fixed_bytes, per_elem)
    bb_max = max(1, budget // per_elem)

    if batch_block is None:
        Bb = max(1, min(B, int(bb_max)))
        if B >= 2:
            Bb = min(Bb, _cdiv(B, 2))                     # keep >= 2 grid steps
        row_align = max(1, _cdiv(256, NN))                # Bb*NN multiple of 256 (MXU rows)
        if Bb >= 2 * row_align:
            Bb = (Bb // row_align) * row_align
        n_blocks = _cdiv(B, Bb)
        if n_blocks > 1 and (n_blocks % 2):               # even block count -> balanced 2-TC split
            n_blocks += 1
            Bb = _cdiv(B, n_blocks)
    else:
        Bb = max(1, int(batch_block))
        n_blocks = _cdiv(B, Bb)

    B_pad = n_blocks * Bb
    if B_pad != B:
        feat = jnp.pad(feat, ((0, B_pad - B), (0, 0), (0, 0)))

    kernel = functools.partial(_energy_kernel, n_hidden, Bb, N, Nn, Wk)

    def _run(use_pipeline_hints):
        if use_pipeline_hints:
            feat_spec = pl.BlockSpec((Bb, NN, Wk), lambda i: (i, 0, 0),
                                     pipeline_mode=pl.Buffered(feature_buffers))
            w_spec = pl.BlockSpec(weight_pack.shape, lambda i: (0, 0, 0),
                                  pipeline_mode=pl.Buffered(1))
            b_spec = pl.BlockSpec(bias_pack.shape, lambda i: (0, 0),
                                  pipeline_mode=pl.Buffered(1))
        else:
            feat_spec = pl.BlockSpec((Bb, NN, Wk), lambda i: (i, 0, 0))
            w_spec = pl.BlockSpec(weight_pack.shape, lambda i: (0, 0, 0))
            b_spec = pl.BlockSpec(bias_pack.shape, lambda i: (0, 0))
        return pl.pallas_call(
            kernel,
            out_shape=jax.ShapeDtypeStruct((n_blocks, 1, Bb), jnp.float32),
            grid=(n_blocks,),
            in_specs=[feat_spec, w_spec, b_spec],
            out_specs=pl.BlockSpec((1, 1, Bb), lambda i: (i, 0, 0)),
            compiler_params=pltpu.CompilerParams(
                dimension_semantics=("parallel",),        # batch blocks are independent
                vmem_limit_bytes=int(vmem_limit),
            ),
        )(feat, weight_pack, bias_pack)

    try:
        out = jax.block_until_ready(_run(True))
    except Exception:
        # pl.Buffered pipeline hints unavailable/rejected on this build: plain default specs.
        out = _run(False)

    energy = out.reshape(B_pad)[:B][:, None]              # (B, 1)

    # ---- prior energy: sum over pairs of (sigma/R)^n, f32, computed in the glue ----
    # TODO(synk): assumes every neighbor slot is valid (no padded/sentinel neighbors -> R=0).
    U0 = jnp.sum((prior_energy_sigma / R) ** prior_energy_n, axis=(1, 2))  # (B, 1)
    return energy + U0


# ----------------------------------------------------------------------------
# Deterministic synthetic parameter init (shapes from EnergyPredictor_v1.__init__)
# ----------------------------------------------------------------------------
def init_params(key, in_dim, neighbor_hidden_dim, particle_hidden_dim, n_layers):
    H, D = neighbor_hidden_dim, particle_hidden_dim
    keys = iter(jax.random.split(key, 64))

    def lin(i, o, scale=0.1):
        return (
            scale * jax.random.normal(next(keys), (i, o), jnp.float32),
            scale * jax.random.normal(next(keys), (1, o), jnp.float32),
        )

    params = []
    # neighbors_net: Linear(in,H) ReLU, (n_layers-1)x[Linear(H,H) BN ReLU Drop], Linear(H,H)
    w, b = lin(in_dim, H); params += [w, b]
    for _ in range(n_layers - 1):
        w, b = lin(H, H); params += [w, b]
        params += [
            jnp.ones((1, H), jnp.float32),   # BN gamma
            jnp.zeros((1, H), jnp.float32),  # BN beta
            jnp.zeros((1, H), jnp.float32),  # BN running_mean
            jnp.ones((1, H), jnp.float32),   # BN running_var
        ]
    w, b = lin(H, H); params += [w, b]
    # DTanh phi (pool='max1'): PermEqui1_max(H->D), (D->D), (D->D)
    for i, o in [(H, D), (D, D), (D, D)]:
        w, b = lin(i, o); params += [w, b]
    # DTanh rho: Linear(D,D) -> tanh -> Linear(D,1)
    w, b = lin(D, D); params += [w, b]
    w, b = lin(D, 1); params += [w, b]
    return params


if __name__ == "__main__":
    B, N, Nn = 2, 8, 4
    IN_DIM = 19
    NEIGHBOR_HIDDEN = 32
    PARTICLE_HIDDEN = 32
    N_LAYERS = 2
    BOX_LEN = 6.0

    key = jax.random.PRNGKey(0)
    k1, k2, k3 = jax.random.split(key, 3)

    # jittered lattice positions -> well-separated pair distances
    lattice = jnp.stack(
        jnp.meshgrid(jnp.arange(2), jnp.arange(2), jnp.arange(2), indexing="ij"),
        axis=-1,
    ).reshape(-1, 3).astype(jnp.float32)                       # (8, 3)
    base = lattice * (BOX_LEN / 2.0) + BOX_LEN / 4.0
    position = base[None] + 0.2 * jax.random.normal(k1, (B, N, 3), jnp.float32)

    # random rotation matrices via QR
    A = jax.random.normal(k2, (B, N, 3, 3), jnp.float32)
    orientation_R, _ = jnp.linalg.qr(A)

    # neighbor list: the next Nn particles (never self)
    idx = (jnp.arange(N)[:, None] + jnp.arange(1, Nn + 1)[None, :]) % N
    neighbor_list = jnp.broadcast_to(idx[None], (B, N, Nn)).astype(jnp.int32)

    params = init_params(k3, IN_DIM, NEIGHBOR_HIDDEN, PARTICLE_HIDDEN, N_LAYERS)

    energy = energy_predictor_forward(
        position,
        orientation_R,
        neighbor_list,
        params,
        box_len=BOX_LEN,
        n_layers=N_LAYERS,
        prior_energy_sigma=1.0,
        prior_energy_n=12,
    )
    jax.block_until_ready(energy)
    assert energy.shape == (B, 1)
    print("KERNEL_OK")
</pallas_src>

<mosaic_0001>
module attributes {stable_mosaic.version = 11 : i64} {
  func.func @_energy_kernel(%arg0: i32, %arg1: memref<1x32x32xbf16, #tpu.memory_space<vmem>>, %arg2: memref<8x32x32xbf16, #tpu.memory_space<vmem>>, %arg3: memref<8x32xf32, #tpu.memory_space<vmem>>, %arg4: memref<1x1x1xf32, #tpu.memory_space<vmem>>) attributes {dimension_semantics = [#tpu.dimension_semantics<parallel>], iteration_bounds = array<i64: 2>, scalar_prefetch = 0 : i64, scratch_operands = 0 : i64, tpu.core_type = #tpu.core_type<tc>, window_params = [{pipeline_mode = #tpu.pipeline_mode<double_buffered>, transform_indices = @transform_0, window_bounds = array<i64: 1, 32, 32>}, {pipeline_mode = #tpu.pipeline_mode<synchronous>, transform_indices = @transform_1, window_bounds = array<i64: 8, 32, 32>}, {pipeline_mode = #tpu.pipeline_mode<synchronous>, transform_indices = @transform_2, window_bounds = array<i64: 8, 32>}, {transform_indices = @transform_3, window_bounds = array<i64: 1, 1, 1>}]} {
    %c0 = arith.constant 0 : index
    %c0_0 = arith.constant 0 : index
    %0 = vector.load %arg3[%c0, %c0_0] : memref<8x32xf32, #tpu.memory_space<vmem>>, vector<8x32xf32>
    %c0_1 = arith.constant 0 : index
    %c0_2 = arith.constant 0 : index
    %c0_3 = arith.constant 0 : index
    %1 = vector.load %arg1[%c0_1, %c0_2, %c0_3] : memref<1x32x32xbf16, #tpu.memory_space<vmem>>, vector<1x32x32xbf16>
    %2 = vector.shape_cast %1 : vector<1x32x32xbf16> to vector<32x32xbf16>
    %c0_4 = arith.constant 0 : index
    %c0_5 = arith.constant 0 : index
    %c0_6 = arith.constant 0 : index
    %3 = vector.load %arg2[%c0_4, %c0_5, %c0_6] : memref<8x32x32xbf16, #tpu.memory_space<vmem>>, vector<1x32x32xbf16>
    %4 = vector.shape_cast %3 : vector<1x32x32xbf16> to vector<32x32xbf16>
    %cst = arith.constant dense<0.000000e+00> : vector<32x32xf32>
    %5 = tpu.matmul %2, %4, %cst {dimension_numbers = #tpu.dot_dimension_numbers<[1], [0], [0], [1], [0, 0, 1, 1], [], []>} : vector<32x32xbf16>, vector<32x32xbf16>, vector<32x32xf32> -> vector<32x32xf32>
    %6 = vector.extract_strided_slice %0 {offsets = [0, 0], sizes = [1, 32], strides = [1, 1]} : vector<8x32xf32> to vector<1x32xf32>
    %7 = vector.broadcast %6 : vector<1x32xf32> to vector<32x32xf32>
    %8 = arith.addf %5, %7 : vector<32x32xf32>
    %cst_7 = arith.constant 0.000000e+00 : f32
    %9 = vector.broadcast %cst_7 : f32 to vector<32x32xf32>
    %10 = arith.maximumf %8, %9 : vector<32x32xf32>
    %c1 = arith.constant 1 : index
    %c0_8 = arith.constant 0 : index
    %c0_9 = arith.constant 0 : index
    %11 = vector.load %arg2[%c1, %c0_8, %c0_9] : memref<8x32x32xbf16, #tpu.memory_space<vmem>>, vector<1x32x32xbf16>
    %12 = vector.shape_cast %11 : vector<1x32x32xbf16> to vector<32x32xbf16>
    %13 = arith.truncf %10 : vector<32x32xf32> to vector<32x32xbf16>
    %cst_10 = arith.constant dense<0.000000e+00> : vector<32x32xf32>
    %14 = tpu.matmul %13, %12, %cst_10 {dimension_numbers = #tpu.dot_dimension_numbers<[1], [0], [0], [1], [0, 0, 1, 1], [], []>} : vector<32x32xbf16>, vector<32x32xbf16>, vector<32x32xf32> -> vector<32x32xf32>
    %15 = vector.extract_strided_slice %0 {offsets = [1, 0], sizes = [1, 32], strides = [1, 1]} : vector<8x32xf32> to vector<1x32xf32>
    %16 = vector.broadcast %15 : vector<1x32xf32> to vector<32x32xf32>
    %17 = arith.addf %14, %16 : vector<32x32xf32>
    %cst_11 = arith.constant 0.000000e+00 : f32
    %18 = vector.broadcast %cst_11 : f32 to vector<32x32xf32>
    %19 = arith.maximumf %17, %18 : vector<32x32xf32>
    %c2 = arith.constant 2 : index
    %c0_12 = arith.constant 0 : index
    %c0_13 = arith.constant 0 : index
    %20 = vector.load %arg2[%c2, %c0_12, %c0_13] : memref<8x32x32xbf16, #tpu.memory_space<vmem>>, vector<1x32x32xbf16>
    %21 = vector.shape_cast %20 : vector<1x32x32xbf16> to vector<32x32xbf16>
    %22 = arith.truncf %19 : vector<32x32xf32> to vector<32x32xbf16>
    %cst_14 = arith.constant dense<0.000000e+00> : vector<32x32xf32>
    %23 = tpu.matmul %22, %21, %cst_14 {dimension_numbers = #tpu.dot_dimension_numbers<[1], [0], [0], [1], [0, 0, 1, 1], [], []>} : vector<32x32xbf16>, vector<32x32xbf16>, vector<32x32xf32> -> vector<32x32xf32>
    %24 = vector.extract_strided_slice %0 {offsets = [2, 0], sizes = [1, 32], strides = [1, 1]} : vector<8x32xf32> to vector<1x32xf32>
    %25 = vector.broadcast %24 : vector<1x32xf32> to vector<32x32xf32>
    %26 = arith.addf %23, %25 : vector<32x32xf32>
    %27 = vector.shape_cast %26 : vector<32x32xf32> to vector<1x4x8x32xf32>
    %28 = vector.extract_strided_slice %27 {offsets = [0, 0, 0, 0], sizes = [1, 1, 8, 32], strides = [1, 1, 1, 1]} : vector<1x4x8x32xf32> to vector<1x1x8x32xf32>
    %29 = vector.shape_cast %28 : vector<1x1x8x32xf32> to vector<1x8x32xf32>
    %30 = vector.extract_strided_slice %27 {offsets = [0, 1, 0, 0], sizes = [1, 1, 8, 32], strides = [1, 1, 1, 1]} : vector<1x4x8x32xf32> to vector<1x1x8x32xf32>
    %31 = vector.shape_cast %30 : vector<1x1x8x32xf32> to vector<1x8x32xf32>
    %32 = vector.extract_strided_slice %27 {offsets = [0, 2, 0, 0], sizes = [1, 1, 8, 32], strides = [1, 1, 1, 1]} : vector<1x4x8x32xf32> to vector<1x1x8x32xf32>
    %33 = vector.shape_cast %32 : vector<1x1x8x32xf32> to vector<1x8x32xf32>
    %34 = vector.extract_strided_slice %27 {offsets = [0, 3, 0, 0], sizes = [1, 1, 8, 32], strides = [1, 1, 1, 1]} : vector<1x4x8x32xf32> to vector<1x1x8x32xf32>
    %35 = vector.shape_cast %34 : vector<1x1x8x32xf32> to vector<1x8x32xf32>
    %36 = arith.addf %29, %31 : vector<1x8x32xf32>
    %37 = arith.addf %33, %35 : vector<1x8x32xf32>
    %38 = arith.addf %36, %37 : vector<1x8x32xf32>
    %cst_15 = arith.constant 2.500000e-01 : f32
    %39 = vector.broadcast %cst_15 : f32 to vector<1x8x32xf32>
    %40 = arith.mulf %38, %39 : vector<1x8x32xf32>
    %cst_16 = arith.constant dense<0xFF800000> : vector<1x32xf32>
    %41 = vector.multi_reduction <maximumf>, %40, %cst_16 [1] : vector<1x8x32xf32> to vector<1x32xf32>
    %42 = vector.shape_cast %41 : vector<1x32xf32> to vector<1x1x32xf32>
    %43 = vector.broadcast %42 : vector<1x1x32xf32> to vector<1x8x32xf32>
    %44 = arith.subf %40, %43 : vector<1x8x32xf32>
    %45 = vector.shape_cast %44 : vector<1x8x32xf32> to vector<8x32xf32>
    %c3 = arith.constant 3 : index
    %c0_17 = arith.constant 0 : index
    %c0_18 = arith.constant 0 : index
    %46 = vector.load %arg2[%c3, %c0_17, %c0_18] : memref<8x32x32xbf16, #tpu.memory_space<vmem>>, vector<1x32x32xbf16>
    %47 = vector.shape_cast %46 : vector<1x32x32xbf16> to vector<32x32xbf16>
    %48 = arith.truncf %45 : vector<8x32xf32> to vector<8x32xbf16>
    %cst_19 = arith.constant dense<0.000000e+00> : vector<8x32xf32>
    %49 = tpu.matmul %48, %47, %cst_19 {dimension_numbers = #tpu.dot_dimension_numbers<[1], [0], [0], [1], [0, 0, 1, 1], [], []>} : vector<8x32xbf16>, vector<32x32xbf16>, vector<8x32xf32> -> vector<8x32xf32>
    %50 = vector.extract_strided_slice %0 {offsets = [3, 0], sizes = [1, 32], strides = [1, 1]} : vector<8x32xf32> to vector<1x32xf32>
    %51 = vector.broadcast %50 : vector<1x32xf32> to vector<8x32xf32>
    %52 = arith.addf %49, %51 : vector<8x32xf32>
    %53 = math.tanh %52 : vector<8x32xf32>
    %54 = vector.shape_cast %53 : vector<8x32xf32> to vector<1x8x32xf32>
    %cst_20 = arith.constant dense<0xFF800000> : vector<1x32xf32>
    %55 = vector.multi_reduction <maximumf>, %54, %cst_20 [1] : vector<1x8x32xf32> to vector<1x32xf32>
    %56 = vector.shape_cast %55 : vector<1x32xf32> to vector<1x1x32xf32>
    %57 = vector.broadcast %56 : vector<1x1x32xf32> to vector<1x8x32xf32>
    %58 = arith.subf %54, %57 : vector<1x8x32xf32>
    %59 = vector.shape_cast %58 : vector<1x8x32xf32> to vector<8x32xf32>
    %c4 = arith.constant 4 : index
    %c0_21 = arith.constant 0 : index
    %c0_22 = arith.constant 0 : index
    %60 = vector.load %arg2[%c4, %c0_21, %c0_22] : memref<8x32x32xbf16, #tpu.memory_space<vmem>>, vector<1x32x32xbf16>
    %61 = vector.shape_cast %60 : vector<1x32x32xbf16> to vector<32x32xbf16>
    %62 = arith.truncf %59 : vector<8x32xf32> to vector<8x32xbf16>
    %cst_23 = arith.constant dense<0.000000e+00> : vector<8x32xf32>
    %63 = tpu.matmul %62, %61, %cst_23 {dimension_numbers = #tpu.dot_dimension_numbers<[1], [0], [0], [1], [0, 0, 1, 1], [], []>} : vector<8x32xbf16>, vector<32x32xbf16>, vector<8x32xf32> -> vector<8x32xf32>
    %64 = vector.extract_strided_slice %0 {offsets = [4, 0], sizes = [1, 32], strides = [1, 1]} : vector<8x32xf32> to vector<1x32xf32>
    %65 = vector.broadcast %64 : vector<1x32xf32> to vector<8x32xf32>
    %66 = arith.addf %63, %65 : vector<8x32xf32>
    %67 = math.tanh %66 : vector<8x32xf32>
    %68 = vector.shape_cast %67 : vector<8x32xf32> to vector<1x8x32xf32>
    %cst_24 = arith.constant dense<0xFF800000> : vector<1x32xf32>
    %69 = vector.multi_reduction <maximumf>, %68, %cst_24 [1] : vector<1x8x32xf32> to vector<1x32xf32>
    %70 = vector.shape_cast %69 : vector<1x32xf32> to vector<1x1x32xf32>
    %71 = vector.broadcast %70 : vector<1x1x32xf32> to vector<1x8x32xf32>
    %72 = arith.subf %68, %71 : vector<1x8x32xf32>
    %73 = vector.shape_cast %72 : vector<1x8x32xf32> to vector<8x32xf32>
    %c5 = arith.constant 5 : index
    %c0_25 = arith.constant 0 : index
    %c0_26 = arith.constant 0 : index
    %74 = vector.load %arg2[%c5, %c0_25, %c0_26] : memref<8x32x32xbf16, #tpu.memory_space<vmem>>, vector<1x32x32xbf16>
    %75 = vector.shape_cast %74 : vector<1x32x32xbf16> to vector<32x32xbf16>
    %76 = arith.truncf %73 : vector<8x32xf32> to vector<8x32xbf16>
    %cst_27 = arith.constant dense<0.000000e+00> : vector<8x32xf32>
    %77 = tpu.matmul %76, %75, %cst_27 {dimension_numbers = #tpu.dot_dimension_numbers<[1], [0], [0], [1], [0, 0, 1, 1], [], []>} : vector<8x32xbf16>, vector<32x32xbf16>, vector<8x32xf32> -> vector<8x32xf32>
    %78 = vector.extract_strided_slice %0 {offsets = [5, 0], sizes = [1, 32], strides = [1, 1]} : vector<8x32xf32> to vector<1x32xf32>
    %79 = vector.broadcast %78 : vector<1x32xf32> to vector<8x32xf32>
    %80 = arith.addf %77, %79 : vector<8x32xf32>
    %81 = math.tanh %80 : vector<8x32xf32>
    %82 = vector.shape_cast %81 : vector<8x32xf32> to vector<1x8x32xf32>
    %cst_28 = arith.constant dense<0xFF800000> : vector<1x32xf32>
    %83 = vector.multi_reduction <maximumf>, %82, %cst_28 [1] : vector<1x8x32xf32> to vector<1x32xf32>
    %c6 = arith.constant 6 : index
    %c0_29 = arith.constant 0 : index
    %c0_30 = arith.constant 0 : index
    %84 = vector.load %arg2[%c6, %c0_29, %c0_30] : memref<8x32x32xbf16, #tpu.memory_space<vmem>>, vector<1x32x32xbf16>
    %85 = vector.shape_cast %84 : vector<1x32x32xbf16> to vector<32x32xbf16>
    %86 = arith.truncf %83 : vector<1x32xf32> to vector<1x32xbf16>
    %cst_31 = arith.constant dense<0.000000e+00> : vector<1x32xf32>
    %87 = tpu.matmul %86, %85, %cst_31 {dimension_numbers = #tpu.dot_dimension_numbers<[1], [0], [0], [1], [0, 0, 1, 1], [], []>} : vector<1x32xbf16>, vector<32x32xbf16>, vector<1x32xf32> -> vector<1x32xf32>
    %88 = vector.extract_strided_slice %0 {offsets = [6, 0], sizes = [1, 32], strides = [1, 1]} : vector<8x32xf32> to vector<1x32xf32>
    %89 = arith.addf %87, %88 : vector<1x32xf32>
    %90 = math.tanh %89 : vector<1x32xf32>
    %c7 = arith.constant 7 : index
    %c0_32 = arith.constant 0 : index
    %c0_33 = arith.constant 0 : index
    %91 = vector.load %arg2[%c7, %c0_32, %c0_33] : memref<8x32x32xbf16, #tpu.memory_space<vmem>>, vector<1x32x32xbf16>
    %92 = vector.shape_cast %91 : vector<1x32x32xbf16> to vector<32x32xbf16>
    %93 = arith.truncf %90 : vector<1x32xf32> to vector<1x32xbf16>
    %cst_34 = arith.constant dense<0.000000e+00> : vector<1x32xf32>
    %94 = tpu.matmul %93, %92, %cst_34 {dimension_numbers = #tpu.dot_dimension_numbers<[1], [0], [0], [1], [0, 0, 1, 1], [], []>} : vector<1x32xbf16>, vector<32x32xbf16>, vector<1x32xf32> -> vector<1x32xf32>
    %95 = vector.extract_strided_slice %0 {offsets = [7, 0], sizes = [1, 32], strides = [1, 1]} : vector<8x32xf32> to vector<1x32xf32>
    %96 = arith.addf %94, %95 : vector<1x32xf32>
    %97 = vector.extract_strided_slice %96 {offsets = [0, 0], sizes = [1, 1], strides = [1, 1]} : vector<1x32xf32> to vector<1x1xf32>
    %98 = tpu.transpose %97, [1, 0] : vector<1x1xf32> -> vector<1x1xf32>
    %c0_35 = arith.constant 0 : index
    %c0_36 = arith.constant 0 : index
    %c0_37 = arith.constant 0 : index
    %99 = vector.load %arg4[%c0_35, %c0_36, %c0_37] : memref<1x1x1xf32, #tpu.memory_space<vmem>>, vector<1x1x1xf32>
    %100 = vector.shape_cast %99 : vector<1x1x1xf32> to vector<1x1xf32>
    %101 = vector.shape_cast %98 : vector<1x1xf32> to vector<1x1x1xf32>
    tpu.vector_store %arg4[%c0_35, %c0_36, %c0_37], %101 {strides = array<i32>} : memref<1x1x1xf32, #tpu.memory_space<vmem>>, vector<1x1x1xf32>,
    return
  }
  func.func @transform_0(%arg0: i32) -> (i32, i32, i32) {
    %c0_i32 = arith.constant 0 : i32
    %c0_i32_0 = arith.constant 0 : i32
    %c0_i32_1 = arith.constant 0 : i32
    return %arg0, %c0_i32, %c0_i32_0 : i32, i32, i32
  }
  func.func @transform_1(%arg0: i32) -> (i32, i32, i32) {
    %c0_i32 = arith.constant 0 : i32
    %c0_i32_0 = arith.constant 0 : i32
    %c0_i32_1 = arith.constant 0 : i32
    %c0_i32_2 = arith.constant 0 : i32
    return %c0_i32, %c0_i32_0, %c0_i32_1 : i32, i32, i32
  }
  func.func @transform_2(%arg0: i32) -> (i32, i32) {
    %c0_i32 = arith.constant 0 : i32
    %c0_i32_0 = arith.constant 0 : i32
    %c0_i32_1 = arith.constant 0 : i32
    return %c0_i32, %c0_i32_0 : i32, i32
  }
  func.func @transform_3(%arg0: i32) -> (i32, i32, i32) {
    %c0_i32 = arith.constant 0 : i32
    %c0_i32_0 = arith.constant 0 : i32
    %c0_i32_1 = arith.constant 0 : i32
    return %arg0, %c0_i32, %c0_i32_0 : i32, i32, i32
  }
}

module attributes {stable_mosaic.version = 11 : i64} {
  func.func @_energy_kernel(%arg0: i32, %arg1: memref<1x32x32xbf16, #tpu.memory_space<vmem>>, %arg2: memref<8x32x32xbf16, #tpu.memory_space<vmem>>, %arg3: memref<8x32xf32, #tpu.memory_space<vmem>>, %arg4: memref<1x1x1xf32, #tpu.memory_space<vmem>>) attributes {dimension_semantics = [#tpu.dimension_semantics<parallel>], iteration_bounds = array<i64: 2>, scalar_prefetch = 0 : i64, scratch_operands = 0 : i64, tpu.core_type = #tpu.core_type<tc>, window_params = [{transform_indices = @transform_0, window_bounds = array<i64: 1, 32, 32>}, {pipeline_mode = #tpu.pipeline_mode<synchronous>, transform_indices = @transform_1, window_bounds = array<i64: 8, 32, 32>}, {pipeline_mode = #tpu.pipeline_mode<synchronous>, transform_indices = @transform_2, window_bounds = array<i64: 8, 32>}, {transform_indices = @transform_3, window_bounds = array<i64: 1, 1, 1>}]} {
    %c0 = arith.constant 0 : index
    %c0_0 = arith.constant 0 : index
    %0 = vector.load %arg3[%c0, %c0_0] : memref<8x32xf32, #tpu.memory_space<vmem>>, vector<8x32xf32>
    %c0_1 = arith.constant 0 : index
    %c0_2 = arith.constant 0 : index
    %c0_3 = arith.constant 0 : index
    %1 = vector.load %arg1[%c0_1, %c0_2, %c0_3] : memref<1x32x32xbf16, #tpu.memory_space<vmem>>, vector<1x32x32xbf16>
    %2 = vector.shape_cast %1 : vector<1x32x32xbf16> to vector<32x32xbf16>
    %c0_4 = arith.constant 0 : index
    %c0_5 = arith.constant 0 : index
    %c0_6 = arith.constant 0 : index
    %3 = vector.load %arg2[%c0_4, %c0_5, %c0_6] : memref<8x32x32xbf16, #tpu.memory_space<vmem>>, vector<1x32x32xbf16>
    %4 = vector.shape_cast %3 : vector<1x32x32xbf16> to vector<32x32xbf16>
    %cst = arith.constant dense<0.000000e+00> : vector<32x32xf32>
    %5 = tpu.matmul %2, %4, %cst {dimension_numbers = #tpu.dot_dimension_numbers<[1], [0], [0], [1], [0, 0, 1, 1], [], []>} : vector<32x32xbf16>, vector<32x32xbf16>, vector<32x32xf32> -> vector<32x32xf32>
    %6 = vector.extract_strided_slice %0 {offsets = [0, 0], sizes = [1, 32], strides = [1, 1]} : vector<8x32xf32> to vector<1x32xf32>
    %7 = vector.broadcast %6 : vector<1x32xf32> to vector<32x32xf32>
    %8 = arith.addf %5, %7 : vector<32x32xf32>
    %cst_7 = arith.constant 0.000000e+00 : f32
    %9 = vector.broadcast %cst_7 : f32 to vector<32x32xf32>
    %10 = arith.maximumf %8, %9 : vector<32x32xf32>
    %c1 = arith.constant 1 : index
    %c0_8 = arith.constant 0 : index
    %c0_9 = arith.constant 0 : index
    %11 = vector.load %arg2[%c1, %c0_8, %c0_9] : memref<8x32x32xbf16, #tpu.memory_space<vmem>>, vector<1x32x32xbf16>
    %12 = vector.shape_cast %11 : vector<1x32x32xbf16> to vector<32x32xbf16>
    %13 = arith.truncf %10 : vector<32x32xf32> to vector<32x32xbf16>
    %cst_10 = arith.constant dense<0.000000e+00> : vector<32x32xf32>
    %14 = tpu.matmul %13, %12, %cst_10 {dimension_numbers = #tpu.dot_dimension_numbers<[1], [0], [0], [1], [0, 0, 1, 1], [], []>} : vector<32x32xbf16>, vector<32x32xbf16>, vector<32x32xf32> -> vector<32x32xf32>
    %15 = vector.extract_strided_slice %0 {offsets = [1, 0], sizes = [1, 32], strides = [1, 1]} : vector<8x32xf32> to vector<1x32xf32>
    %16 = vector.broadcast %15 : vector<1x32xf32> to vector<32x32xf32>
    %17 = arith.addf %14, %16 : vector<32x32xf32>
    %cst_11 = arith.constant 0.000000e+00 : f32
    %18 = vector.broadcast %cst_11 : f32 to vector<32x32xf32>
    %19 = arith.maximumf %17, %18 : vector<32x32xf32>
    %c2 = arith.constant 2 : index
    %c0_12 = arith.constant 0 : index
    %c0_13 = arith.constant 0 : index
    %20 = vector.load %arg2[%c2, %c0_12, %c0_13] : memref<8x32x32xbf16, #tpu.memory_space<vmem>>, vector<1x32x32xbf16>
    %21 = vector.shape_cast %20 : vector<1x32x32xbf16> to vector<32x32xbf16>
    %22 = arith.truncf %19 : vector<32x32xf32> to vector<32x32xbf16>
    %cst_14 = arith.constant dense<0.000000e+00> : vector<32x32xf32>
    %23 = tpu.matmul %22, %21, %cst_14 {dimension_numbers = #tpu.dot_dimension_numbers<[1], [0], [0], [1], [0, 0, 1, 1], [], []>} : vector<32x32xbf16>, vector<32x32xbf16>, vector<32x32xf32> -> vector<32x32xf32>
    %24 = vector.extract_strided_slice %0 {offsets = [2, 0], sizes = [1, 32], strides = [1, 1]} : vector<8x32xf32> to vector<1x32xf32>
    %25 = vector.broadcast %24 : vector<1x32xf32> to vector<32x32xf32>
    %26 = arith.addf %23, %25 : vector<32x32xf32>
    %27 = vector.shape_cast %26 : vector<32x32xf32> to vector<1x4x8x32xf32>
    %28 = vector.extract_strided_slice %27 {offsets = [0, 0, 0, 0], sizes = [1, 1, 8, 32], strides = [1, 1, 1, 1]} : vector<1x4x8x32xf32> to vector<1x1x8x32xf32>
    %29 = vector.shape_cast %28 : vector<1x1x8x32xf32> to vector<1x8x32xf32>
    %30 = vector.extract_strided_slice %27 {offsets = [0, 1, 0, 0], sizes = [1, 1, 8, 32], strides = [1, 1, 1, 1]} : vector<1x4x8x32xf32> to vector<1x1x8x32xf32>
    %31 = vector.shape_cast %30 : vector<1x1x8x32xf32> to vector<1x8x32xf32>
    %32 = vector.extract_strided_slice %27 {offsets = [0, 2, 0, 0], sizes = [1, 1, 8, 32], strides = [1, 1, 1, 1]} : vector<1x4x8x32xf32> to vector<1x1x8x32xf32>
    %33 = vector.shape_cast %32 : vector<1x1x8x32xf32> to vector<1x8x32xf32>
    %34 = vector.extract_strided_slice %27 {offsets = [0, 3, 0, 0], sizes = [1, 1, 8, 32], strides = [1, 1, 1, 1]} : vector<1x4x8x32xf32> to vector<1x1x8x32xf32>
    %35 = vector.shape_cast %34 : vector<1x1x8x32xf32> to vector<1x8x32xf32>
    %36 = arith.addf %29, %31 : vector<1x8x32xf32>
    %37 = arith.addf %33, %35 : vector<1x8x32xf32>
    %38 = arith.addf %36, %37 : vector<1x8x32xf32>
    %cst_15 = arith.constant 2.500000e-01 : f32
    %39 = vector.broadcast %cst_15 : f32 to vector<1x8x32xf32>
    %40 = arith.mulf %38, %39 : vector<1x8x32xf32>
    %cst_16 = arith.constant dense<0xFF800000> : vector<1x32xf32>
    %41 = vector.multi_reduction <maximumf>, %40, %cst_16 [1] : vector<1x8x32xf32> to vector<1x32xf32>
    %42 = vector.shape_cast %41 : vector<1x32xf32> to vector<1x1x32xf32>
    %43 = vector.broadcast %42 : vector<1x1x32xf32> to vector<1x8x32xf32>
    %44 = arith.subf %40, %43 : vector<1x8x32xf32>
    %45 = vector.shape_cast %44 : vector<1x8x32xf32> to vector<8x32xf32>
    %c3 = arith.constant 3 : index
    %c0_17 = arith.constant 0 : index
    %c0_18 = arith.constant 0 : index
    %46 = vector.load %arg2[%c3, %c0_17, %c0_18] : memref<8x32x32xbf16, #tpu.memory_space<vmem>>, vector<1x32x32xbf16>
    %47 = vector.shape_cast %46 : vector<1x32x32xbf16> to vector<32x32xbf16>
    %48 = arith.truncf %45 : vector<8x32xf32> to vector<8x32xbf16>
    %cst_19 = arith.constant dense<0.000000e+00> : vector<8x32xf32>
    %49 = tpu.matmul %48, %47, %cst_19 {dimension_numbers = #tpu.dot_dimension_numbers<[1], [0], [0], [1], [0, 0, 1, 1], [], []>} : vector<8x32xbf16>, vector<32x32xbf16>, vector<8x32xf32> -> vector<8x32xf32>
    %50 = vector.extract_strided_slice %0 {offsets = [3, 0], sizes = [1, 32], strides = [1, 1]} : vector<8x32xf32> to vector<1x32xf32>
    %51 = vector.broadcast %50 : vector<1x32xf32> to vector<8x32xf32>
    %52 = arith.addf %49, %51 : vector<8x32xf32>
    %53 = math.tanh %52 : vector<8x32xf32>
    %54 = vector.shape_cast %53 : vector<8x32xf32> to vector<1x8x32xf32>
    %cst_20 = arith.constant dense<0xFF800000> : vector<1x32xf32>
    %55 = vector.multi_reduction <maximumf>, %54, %cst_20 [1] : vector<1x8x32xf32> to vector<1x32xf32>
    %56 = vector.shape_cast %55 : vector<1x32xf32> to vector<1x1x32xf32>
    %57 = vector.broadcast %56 : vector<1x1x32xf32> to vector<1x8x32xf32>
    %58 = arith.subf %54, %57 : vector<1x8x32xf32>
    %59 = vector.shape_cast %58 : vector<1x8x32xf32> to vector<8x32xf32>
    %c4 = arith.constant 4 : index
    %c0_21 = arith.constant 0 : index
    %c0_22 = arith.constant 0 : index
    %60 = vector.load %arg2[%c4, %c0_21, %c0_22] : memref<8x32x32xbf16, #tpu.memory_space<vmem>>, vector<1x32x32xbf16>
    %61 = vector.shape_cast %60 : vector<1x32x32xbf16> to vector<32x32xbf16>
    %62 = arith.truncf %59 : vector<8x32xf32> to vector<8x32xbf16>
    %cst_23 = arith.constant dense<0.000000e+00> : vector<8x32xf32>
    %63 = tpu.matmul %62, %61, %cst_23 {dimension_numbers = #tpu.dot_dimension_numbers<[1], [0], [0], [1], [0, 0, 1, 1], [], []>} : vector<8x32xbf16>, vector<32x32xbf16>, vector<8x32xf32> -> vector<8x32xf32>
    %64 = vector.extract_strided_slice %0 {offsets = [4, 0], sizes = [1, 32], strides = [1, 1]} : vector<8x32xf32> to vector<1x32xf32>
    %65 = vector.broadcast %64 : vector<1x32xf32> to vector<8x32xf32>
    %66 = arith.addf %63, %65 : vector<8x32xf32>
    %67 = math.tanh %66 : vector<8x32xf32>
    %68 = vector.shape_cast %67 : vector<8x32xf32> to vector<1x8x32xf32>
    %cst_24 = arith.constant dense<0xFF800000> : vector<1x32xf32>
    %69 = vector.multi_reduction <maximumf>, %68, %cst_24 [1] : vector<1x8x32xf32> to vector<1x32xf32>
    %70 = vector.shape_cast %69 : vector<1x32xf32> to vector<1x1x32xf32>
    %71 = vector.broadcast %70 : vector<1x1x32xf32> to vector<1x8x32xf32>
    %72 = arith.subf %68, %71 : vector<1x8x32xf32>
    %73 = vector.shape_cast %72 : vector<1x8x32xf32> to vector<8x32xf32>
    %c5 = arith.constant 5 : index
    %c0_25 = arith.constant 0 : index
    %c0_26 = arith.constant 0 : index
    %74 = vector.load %arg2[%c5, %c0_25, %c0_26] : memref<8x32x32xbf16, #tpu.memory_space<vmem>>, vector<1x32x32xbf16>
    %75 = vector.shape_cast %74 : vector<1x32x32xbf16> to vector<32x32xbf16>
    %76 = arith.truncf %73 : vector<8x32xf32> to vector<8x32xbf16>
    %cst_27 = arith.constant dense<0.000000e+00> : vector<8x32xf32>
    %77 = tpu.matmul %76, %75, %cst_27 {dimension_numbers = #tpu.dot_dimension_numbers<[1], [0], [0], [1], [0, 0, 1, 1], [], []>} : vector<8x32xbf16>, vector<32x32xbf16>, vector<8x32xf32> -> vector<8x32xf32>
    %78 = vector.extract_strided_slice %0 {offsets = [5, 0], sizes = [1, 32], strides = [1, 1]} : vector<8x32xf32> to vector<1x32xf32>
    %79 = vector.broadcast %78 : vector<1x32xf32> to vector<8x32xf32>
    %80 = arith.addf %77, %79 : vector<8x32xf32>
    %81 = math.tanh %80 : vector<8x32xf32>
    %82 = vector.shape_cast %81 : vector<8x32xf32> to vector<1x8x32xf32>
    %cst_28 = arith.constant dense<0xFF800000> : vector<1x32xf32>
    %83 = vector.multi_reduction <maximumf>, %82, %cst_28 [1] : vector<1x8x32xf32> to vector<1x32xf32>
    %c6 = arith.constant 6 : index
    %c0_29 = arith.constant 0 : index
    %c0_30 = arith.constant 0 : index
    %84 = vector.load %arg2[%c6, %c0_29, %c0_30] : memref<8x32x32xbf16, #tpu.memory_space<vmem>>, vector<1x32x32xbf16>
    %85 = vector.shape_cast %84 : vector<1x32x32xbf16> to vector<32x32xbf16>
    %86 = arith.truncf %83 : vector<1x32xf32> to vector<1x32xbf16>
    %cst_31 = arith.constant dense<0.000000e+00> : vector<1x32xf32>
    %87 = tpu.matmul %86, %85, %cst_31 {dimension_numbers = #tpu.dot_dimension_numbers<[1], [0], [0], [1], [0, 0, 1, 1], [], []>} : vector<1x32xbf16>, vector<32x32xbf16>, vector<1x32xf32> -> vector<1x32xf32>
    %88 = vector.extract_strided_slice %0 {offsets = [6, 0], sizes = [1, 32], strides = [1, 1]} : vector<8x32xf32> to vector<1x32xf32>
    %89 = arith.addf %87, %88 : vector<1x32xf32>
    %90 = math.tanh %89 : vector<1x32xf32>
    %c7 = arith.constant 7 : index
    %c0_32 = arith.constant 0 : index
    %c0_33 = arith.constant 0 : index
    %91 = vector.load %arg2[%c7, %c0_32, %c0_33] : memref<8x32x32xbf16, #tpu.memory_space<vmem>>, vector<1x32x32xbf16>
    %92 = vector.shape_cast %91 : vector<1x32x32xbf16> to vector<32x32xbf16>
    %93 = arith.truncf %90 : vector<1x32xf32> to vector<1x32xbf16>
    %cst_34 = arith.constant dense<0.000000e+00> : vector<1x32xf32>
    %94 = tpu.matmul %93, %92, %cst_34 {dimension_numbers = #tpu.dot_dimension_numbers<[1], [0], [0], [1], [0, 0, 1, 1], [], []>} : vector<1x32xbf16>, vector<32x32xbf16>, vector<1x32xf32> -> vector<1x32xf32>
    %95 = vector.extract_strided_slice %0 {offsets = [7, 0], sizes = [1, 32], strides = [1, 1]} : vector<8x32xf32> to vector<1x32xf32>
    %96 = arith.addf %94, %95 : vector<1x32xf32>
    %97 = vector.extract_strided_slice %96 {offsets = [0, 0], sizes = [1, 1], strides = [1, 1]} : vector<1x32xf32> to vector<1x1xf32>
    %98 = tpu.transpose %97, [1, 0] : vector<1x1xf32> -> vector<1x1xf32>
    %c0_35 = arith.constant 0 : index
    %c0_36 = arith.constant 0 : index
    %c0_37 = arith.constant 0 : index
    %99 = vector.load %arg4[%c0_35, %c0_36, %c0_37] : memref<1x1x1xf32, #tpu.memory_space<vmem>>, vector<1x1x1xf32>
    %100 = vector.shape_cast %99 : vector<1x1x1xf32> to vector<1x1xf32>
    %101 = vector.shape_cast %98 : vector<1x1xf32> to vector<1x1x1xf32>
    tpu.vector_store %arg4[%c0_35, %c0_36, %c0_37], %101 {strides = array<i32>} : memref<1x1x1xf32, #tpu.memory_space<vmem>>, vector<1x1x1xf32>,
    return
  }
  func.func @transform_0(%arg0: i32) -> (i32, i32, i32) {
    %c0_i32 = arith.constant 0 : i32
    %c0_i32_0 = arith.constant 0 : i32
    %c0_i32_1 = arith.constant 0 : i32
    return %arg0, %c0_i32, %c0_i32_0 : i32, i32, i32
  }
  func.func @transform_1(%arg0: i32) -> (i32, i32, i32) {
    %c0_i32 = arith.constant 0 : i32
    %c0_i32_0 = arith.constant 0 : i32
    %c0_i32_1 = arith.constant 0 : i32
    %c0_i32_2 = arith.constant 0 : i32
    return %c0_i32, %c0_i32_0, %c0_i32_1 : i32, i32, i32
  }
  func.func @transform_2(%arg0: i32) -> (i32, i32) {
    %c0_i32 = arith.constant 0 : i32
    %c0_i32_0 = arith.constant 0 : i32
    %c0_i32_1 = arith.constant 0 : i32
    return %c0_i32, %c0_i32_0 : i32, i32
  }
  func.func @transform_3(%arg0: i32) -> (i32, i32, i32) {
    %c0_i32 = arith.constant 0 : i32
    %c0_i32_0 = arith.constant 0 : i32
    %c0_i32_1 = arith.constant 0 : i32
    return %arg0, %c0_i32, %c0_i32_0 : i32, i32, i32
  }
}

</mosaic_0001>

<bundles_post_ra>
// kernel: tpu_custom_call.1
= control target key start
LH: loop header
LB: loop body
LE: loop exit
PB: predicated region body
PF: predicated region fallthrough
CT: control target
= control target key end

     0   :  { %8 = vsyncpa [#allocation3], 0  ;;  %s1184_s0 = inlined_call_operand.hbm [shape: bf16[2,32,32], index: 0, kind: input, shape index: {}]   ;;  %s1185_s1 = inlined_call_operand.hbm [shape: bf16[8,32,32], index: 1, kind: input, shape index: {}]   ;;  %s1186_s2 = inlined_call_operand.hbm [shape: f32[8,32], index: 2, kind: input, shape index: {}]   ;;  %s1187_s3 = inlined_call_operand.vmem [shape: f32[2,1,1], index: 3, kind: output, shape index: {}]  }
   0x1   :  { %10 = vsyncpa [#allocation3 + $0x1], 0 }
   0x2   :  { %11 = vsyncpa [#allocation5], 0  ;;  %s1047_s12 = smov 0   ;;  %s1049_s13 = smov 0  }
   0x3   :  { %s1051_s14 = smov 0   ;;  %s1053_s15 = smov 0  }
   0x4 LB: > { %s1066_s16 = sadd.s32 4294967295, %s1021_s15   ;;  %p37_p0 = scmp.ne.s32.totalorder %s1013_s13, %s1009_s12  ;;  %s1021_s15 = sphi %s1053_s15, %s1194_s15   ;;  %s1017_s14 = sphi %s1051_s14, %s1193_s14   ;;  %s1013_s13 = sphi %s1049_s13, %s1192_s13   ;;  %s1009_s12 = sphi %s1047_s12, %s1191_s12  }
   0x5   : > { %p38_p1 = scmp.eq.s32.totalorder %s1066_s16, 0  ;;  %p707_p2 = scmp.ge.s32.totalorder %s1021_s15, 1 }
   0x6   : > { %p116_p3 = scmp.lt.s32.totalorder %s1021_s15, 3  ;;  %s127_s20 = sshll.u32 %s1185_s1, 4  ;;  %s128_s20 = int_to_ptr.hbm [resolvable:$true] %s127_s20 }
   0x7   : > { %p1074_p4 = por %p38_p1, %p37_p0  ;;  %s1023_s22 = smov [#allocation4]  }
   0x8   : > { %p1081_p5 = pnand %p707_p2, %p116_p3  ;;  %s129_s23 = sshll.u32 %s1023_s22, 4  ;;  %s130_s23 = int_to_ptr.vmem [resolvable:$true] %s129_s23 }
   0x9   : > { %s142_s26 = sshll.u32 %s1186_s2, 4  ;;  %s1024_s27 = smov 64   ;;  %s143_s26 = int_to_ptr.hbm [resolvable:$true] %s142_s26 }
   0xa   : > { %p832_p6 = pneg %p1081_p5  ;;  %s1025_s28 = smov 4  }
   0xb   : > { %s1026_s29 = smov [#allocation6]   ;;  %s1096_s4 = sadd.s32 1, %s1021_s15  }
   0xc   : > { %p833_p7 = pnand %p832_p6, %p38_p1  ;;  %s144_s30 = sshll.u32 %s1026_s29, 4  ;;  %s145_s30 = int_to_ptr.vmem [resolvable:$true] %s144_s30 }
   0xd   : > { %s24_s5 = sadd.s32 1, %s1017_s14  ;;  %s21_s6 = ssub.s32 %s1021_s15, %s1096_s4 }
   0xe   : > { %835 = dma.hbm_to_vmem [thread:$0]  (!%p833_p7), %s128_s20, 2048, %s130_s23, [#allocation5], %s1024_s27, %s1024_s27, %s1025_s28  }
   0xf   : > { %838 = dma.hbm_to_vmem [thread:$0]  (!%p833_p7), %s143_s26, 128, %s145_s30, [#allocation5]  }
  0x10   : > { %p31_p8 = scmp.ne.s32.totalorder %s1017_s14, %s1013_s13  ;;  %p22_p9 = scmp.eq.s32.totalorder %s21_s6, 0 }
  0x11   : > { %p32_p10 = scmp.eq.s32.totalorder %s1021_s15, 0  ;;  %s155_s7 = sand.u32 1, %s1017_s14  }
  0x12   : > { %s1106_s8 = scalar_select %p22_p9, %s1017_s14, %s24_s5  }
  0x13   : > { %p33_p11 = por %p32_p10, %p31_p8  ;;  %p845_p12 = scmp.lt.s32.totalorder %s1021_s15, 2 }
  0x14   : > { %s711_s9 = sshll.u32 %s155_s7, 4  ;;  %s803_s10 = sshll.u32 %s1021_s15, 4 }
  0x15   : > { %s164_s18 = scalar_lea.hbm %s1184_s0, %s803_s10  ;;  %s159_s20 = scalar_lea.vmem [#allocation2], %s711_s9 }
  0x16   : > { %s165_s19 = sshll.u32 %s164_s18, 4  ;;  %s167_s22 = sshll.u32 %s159_s20, 4  ;;  %s166_s19 = int_to_ptr.hbm [resolvable:$true] %s165_s19  ;;  %s168_s22 = int_to_ptr.vmem [resolvable:$true] %s167_s22 }
  0x17   : > { %p1113_p13 = pnand %p845_p12, %p33_p11  ;;  %s156_s24 = scalar_lea.sflag [#allocation3], %s155_s7 }
  0x18   : > { %s953_s25 = sshra.s32 %s166_s19, 4  ;;  %s960_s30 = scalar_lea.hbm %s1184_s0, 32  ;;  %s954_s25 = int_to_ptr.hbm [resolvable:$true] %s953_s25 }
  0x19   : > { %s955_s26 = scalar_lea.hbm %s954_s25, 16  ;;  %p957_p2 = pneg %p1113_p13 }
  0x1a   : > { %p956_p0 = scmp.ne.s32.totalorder %s954_s25, %s955_s26  ;;  %p961_p7 = scmp.lt.s32.totalorder %s954_s25, %s1184_s0 }
  0x1b   : > { %p962_p8 = scmp.lt.s32.totalorder %s960_s30, %s955_s26 }
  0x1c   : > { %p958_p3 = pnand %p957_p2, %p956_p0 }
  0x1d   : > { %p963_p9 = por %p962_p8, %p961_p7 }
  0x1e   : > { %p959_p6 = pneg %p958_p3 }
  0x20   : > { %p964_p10 = pnand %p963_p9, %p959_p6 }
  0x22   : > { %967 = shalt.err (!%p964_p10)
}
  0x23   : > { %842 = dma.hbm_to_vmem [thread:$0]  (!%p1113_p13), %s166_s19, 256, %s168_s22, %s156_s24, %s1024_s27, %s1024_s27, %s1025_s28  }
  0x24   : > { %179 = sbr.rel (%p1081_p5) target bundleno = 1416 (0x588), region = 32  ;;  %s181_s7 = sand.u32 (!%p1081_p5), 1, %s1013_s13  }
  0x25   : > { %s715_s9 = sshll.u32 (!%p1081_p5), %s181_s7, 4  ;;  %s182_s10 = scalar_lea.sflag (!%p1081_p5), [#allocation3], %s181_s7 }
  0x26   : > { %s185_s11 = scalar_lea.vmem (!%p1081_p5), [#allocation2], %s715_s9 }
  0x29   : > { %1000 = dma.done.wait (%p1074_p4), %s182_s10, 256  }
  0x2a   : > { %1002 = vsyncadd (%p1074_p4), %s182_s10, 4294967040 }
  0x2b   : > { %1004 = dma.done.wait (%p38_p1), [#allocation5], 2176  }
  0x2c   : > { %1006 = vsyncadd (%p38_p1), [#allocation5], 4294965120  ;;  %v807_v0 = vld [vmem:[#allocation4 + $0x8] sm:$0xff]  ;;  %v806_v1 = vld [vmem:[#allocation4] sm:$0xff]  ;;  %vm253_vm0 = vcmask 261120   ;;  %p217_p1 = scmp.lt.s32.totalorder %s1066_s16, 1 }
  0x2d   : > { %266 = vmatpush.bf16.msra.mxu0 %v807_v0  ;;  %v804_v2 = vld [vmem:[%s185_s11] sm:$0xff]  ;;  %v805_v3 = vld [vmem:[%s185_s11 + $0x8] sm:$0xff]  ;;  %vm626_vm1 = vcmask 0  }
  0x2e   : > { %v809_v4 = vld [vmem:[#allocation4 + $0x18] sm:$0xff]  ;;  %v808_v5 = vld [vmem:[#allocation4 + $0x10] sm:$0xff]  ;;  %v1143_v6 = vld [vmem:[#allocation6] sm:$0xff]  ;;  %s1196_s16 = smov (!%p217_p1, %s1066_s16), 1 }
  0x2f   : > { %315 = vmatpush.bf16.msra.mxu1 %v809_v4  ;;  %v230_v8 = vperm.slane %v1143_v6, 0  ;;  %v811_v22 = vld [vmem:[#allocation4 + $0x28] sm:$0xff]  ;;  %v810_v23 = vld [vmem:[#allocation4 + $0x20] sm:$0xff]  ;;  %v290_v25 = vperm.slane %v1143_v6, 1  ;;  %v813_v40 = vld [vmem:[#allocation4 + $0x38] sm:$0xff]  ;;  %v339_v44 = vperm.slane %v1143_v6, 2  ;;  %s219_s27 = scalar_lea.vmem %s1187_s3, %s1196_s16 }
  0x30   : > { %364 = vmatpush.bf16.msra.mxu2 %v811_v22  ;;  %417 = vmatpush.bf16.msra.mxu3 %v813_v40  ;;  %v812_v42 = vld [vmem:[#allocation4 + $0x30] sm:$0xff]  ;;  %v815_v63 = vld [vmem:[#allocation4 + $0x48] sm:$0xff]  ;;  %v814_v0 = vld [vmem:[#allocation4 + $0x40] sm:$0xff] }
  0x31   : > { %267 = vmatpush.bf16.msra.mxu0 %v806_v1  ;;  %v817_v1 = vld [vmem:[#allocation4 + $0x58] sm:$0xff] }
  0x33   : > { %316 = vmatpush.bf16.msra.mxu1 %v808_v5 }
  0x34   : > { %734 = vmatmul.msk.bf16.vlgmr.msra.gmra.mxu0 %vm253_vm0, %v804_v2  ;;  %365 = vmatpush.bf16.msra.mxu2 %v810_v23  ;;  %v395_v2 = vperm.slane %v1143_v6, 3 }
  0x35   : > { %418 = vmatpush.bf16.msra.mxu3 %v812_v42  ;;  %505 = vmatpush.bf16.msrb.mxu0 %v817_v1 }
  0x39   : > { %461 = vmatpush.bf16.msrb.mxu3 %v815_v63 }
  0x3d   : > { %462 = vmatpush.bf16.msrb.mxu3 %v814_v0 }
  0x44   : > { %735 = vmatmul.msk.bf16.gmra.mxu0 %vm253_vm0, %v805_v3 }
  0xb1   : > { %v269_v7 = vpop.f32.mrf.mxu0 }
  0xb2   : > { %v270_v9 = vadd.f32 %v269_v7, %v230_v8 }
  0xb4   : > { %v279_v12 = vmax.f32 %v270_v9, 0.0 }
  0xb9   : > { %v271_v10 = vpop.f32.mrf.mxu0 }
  0xba   : > { %v272_v11 = vadd.f32 %v271_v10, %v230_v8 }
  0xbc   : > { %v280_v13 = vmax.f32 %v272_v11, 0.0 }
  0xbe   : > { %v288_v14 = vpack.c.bf16 %v280_v13, %v279_v12 }
  0xc0   : > { %744 = vmatmul.msk.bf16.vlgmr.msra.gmra.mxu1 %vm253_vm0, %v288_v14 }
  0xc1   : > { %v274_v15 = vpop.f32.mrf.mxu0 }
  0xc2   : > { %v275_v16 = vadd.f32 %v274_v15, %v230_v8 }
  0xc4   : > { %v281_v19 = vmax.f32 %v275_v16, 0.0 }
  0xc9   : > { %v276_v17 = vpop.f32.mrf.mxu0 }
  0xca   : > { %v277_v18 = vadd.f32 %v276_v17, %v230_v8  ;;  %v816_v17 = vld [vmem:[#allocation4 + $0x50] sm:$0xff] }
  0xcb   : > { %506 = vmatpush.bf16.msrb.mxu0 %v816_v17 }
  0xcc   : > { %v282_v20 = vmax.f32 %v277_v18, 0.0  ;;  %v819_v18 = vld [vmem:[#allocation4 + $0x68] sm:$0xff] }
  0xcd   : > { %550 = vmatpush.bf16.msrb.mxu1 %v819_v18 }
  0xce   : > { %v289_v21 = vpack.c.bf16 %v282_v20, %v281_v19  ;;  %v439_v19 = vperm.slane %v1143_v6, 4 }
  0xd0   : > { %745 = vmatmul.msk.bf16.gmra.mxu1 %vm253_vm0, %v289_v21 }
 0x13d   : > { %v318_v24 = vpop.f32.mrf.mxu1 }
 0x13e   : > { %v319_v26 = vadd.f32 %v318_v24, %v290_v25 }
 0x140   : > { %v328_v29 = vmax.f32 %v319_v26, 0.0 }
 0x145   : > { %v320_v27 = vpop.f32.mrf.mxu1 }
 0x146   : > { %v321_v28 = vadd.f32 %v320_v27, %v290_v25 }
 0x148   : > { %v329_v30 = vmax.f32 %v321_v28, 0.0 }
 0x14a   : > { %v337_v31 = vpack.c.bf16 %v329_v30, %v328_v29 }
 0x14c   : > { %754 = vmatmul.msk.bf16.vlgmr.msra.gmra.mxu2 %vm253_vm0, %v337_v31 }
 0x14d   : > { %v323_v32 = vpop.f32.mrf.mxu1 }
 0x14e   : > { %v324_v33 = vadd.f32 %v323_v32, %v290_v25 }
 0x150   : > { %v330_v36 = vmax.f32 %v324_v33, 0.0  ;;  %v818_v33 = vld [vmem:[#allocation4 + $0x60] sm:$0xff] }
 0x151   : > { %551 = vmatpush.bf16.msrb.mxu1 %v818_v33 }
 0x155   : > { %v325_v34 = vpop.f32.mrf.mxu1 }
 0x156   : > { %v326_v35 = vadd.f32 %v325_v34, %v290_v25  ;;  %v821_v34 = vld [vmem:[#allocation4 + $0x78] sm:$0xff] }
 0x157   : > { %587 = vmatpush.bf16.msrb.mxu2 %v821_v34 }
 0x158   : > { %v331_v37 = vmax.f32 %v326_v35, 0.0  ;;  %v820_v35 = vld [vmem:[#allocation4 + $0x70] sm:$0xff] }
 0x15a   : > { %v338_v38 = vpack.c.bf16 %v331_v37, %v330_v36  ;;  %v483_v36 = vperm.slane %v1143_v6, 5 }
 0x15b   : > { %588 = vmatpush.bf16.msrb.mxu2 %v820_v35 }
 0x15c   : > { %755 = vmatmul.msk.bf16.gmra.mxu2 %vm253_vm0, %v338_v38 }
 0x1cf   : > { %v367_v39 = vpop.f32.mrf.mxu2 }
 0x1d0   : > { %v368_v47 = vadd.f32 %v367_v39, %v339_v44 }
 0x1d7   : > { %v369_v41 = vpop.f32.mrf.mxu2 }
 0x1d8   : > { %v370_v45 = vadd.f32 %v369_v41, %v339_v44 }
 0x1da   : > { %v377_v50 = vadd.f32 %v370_v45, %v368_v47 }
 0x1df   : > { %v372_v43 = vpop.f32.mrf.mxu2 }
 0x1e0   : > { %v373_v48 = vadd.f32 %v372_v43, %v339_v44 }
 0x1e7   : > { %v374_v46 = vpop.f32.mrf.mxu2 }
 0x1e8   : > { %v375_v49 = vadd.f32 %v374_v46, %v339_v44 }
 0x1ea   : > { %v378_v51 = vadd.f32 %v375_v49, %v373_v48  ;;  %v539_v49 = vrot.slane %v1143_v6, 6 }
 0x1ec   : > { %v379_v52 = vadd.f32 %v378_v51, %v377_v50 }
 0x1ee   : > { %v380_v53 = vmul.f32 0.25, %v379_v52 }
 0x1f0   : > { %v381_v54 = vsel %vm253_vm0, %v380_v53, -inf }
 0x1f1   : > { %v382_v55 = vrot.slane %v381_v54, 4 }
 0x1f3   : > { %v383_v56 = vmax.f32 %v381_v54, %v382_v55  ;;  %v576_v55 = vrot.slane %v1143_v6, 7 }
 0x1f5   : > { %v384_v57 = vrot.slane %v383_v56, 2 }
 0x1f7   : > { %v385_v58 = vmax.f32 %v383_v56, %v384_v57 }
 0x1f9   : > { %v386_v59 = vrot.slane %v385_v58, 1 }
 0x1fb   : > { %v387_v60 = vmax.f32 %v385_v58, %v386_v59 }
 0x1fd   : > { %v388_v61 = vsub.f32 %v380_v53, %v387_v60 }
 0x1ff   : > { %v394_v62 = vpack.c.bf16 %v388_v61, %v388_v61 }
 0x201   : > { %764 = vmatmul.msk.bf16.vlgmr.msra.gmra.mxu3 %vm253_vm0, %v394_v62 }
 0x284   : > { %v420_v3 = vpop.f32.mrf.mxu3 }
 0x285   : > { %v421_v4 = vadd.f32 %v420_v3, %v395_v2 }
 0x287   : > { %885 = vtanh.f32 %v421_v4 }
 0x28c   : > { %v422_v5 = vpop.f32.mrf.mxu3 }
 0x28d   : > { %v886_v7 = vpop.eup %885 }
 0x28e   : > { %v425_v8 = vsel %vm253_vm0, %v886_v7, -inf }
 0x28f   : > { %v426_v9 = vrot.slane %v425_v8, 4 }
 0x291   : > { %v427_v10 = vmax.f32 %v425_v8, %v426_v9 }
 0x293   : > { %v428_v11 = vrot.slane %v427_v10, 2 }
 0x295   : > { %v429_v12 = vmax.f32 %v427_v10, %v428_v11 }
 0x297   : > { %v430_v13 = vrot.slane %v429_v12, 1 }
 0x299   : > { %v431_v14 = vmax.f32 %v429_v12, %v430_v13 }
 0x29b   : > { %v432_v15 = vsub.f32 %v886_v7, %v431_v14 }
 0x29d   : > { %v438_v16 = vpack.c.bf16 %v432_v15, %v432_v15 }
 0x29f   : > { %773 = vmatmul.msk.bf16.vlgmr.msrb.gmra.mxu3 %vm253_vm0, %v438_v16 }
 0x322   : > { %v464_v20 = vpop.f32.mrf.mxu3 }
 0x323   : > { %v465_v21 = vadd.f32 %v464_v20, %v439_v19 }
 0x325   : > { %887 = vtanh.f32 %v465_v21 }
 0x32a   : > { %v466_v22 = vpop.f32.mrf.mxu3 }
 0x32b   : > { %v888_v23 = vpop.eup %887 }
 0x32c   : > { %v469_v24 = vsel %vm253_vm0, %v888_v23, -inf }
 0x32d   : > { %v470_v25 = vrot.slane %v469_v24, 4 }
 0x32f   : > { %v471_v26 = vmax.f32 %v469_v24, %v470_v25 }
 0x331   : > { %v472_v27 = vrot.slane %v471_v26, 2 }
 0x333   : > { %v473_v28 = vmax.f32 %v471_v26, %v472_v27 }
 0x335   : > { %v474_v29 = vrot.slane %v473_v28, 1 }
 0x337   : > { %v475_v30 = vmax.f32 %v473_v28, %v474_v29 }
 0x339   : > { %v476_v31 = vsub.f32 %v888_v23, %v475_v30 }
 0x33b   : > { %v482_v32 = vpack.c.bf16 %v476_v31, %v476_v31 }
 0x33d   : > { %782 = vmatmul.msk.bf16.vlgmr.msrb.gmra.mxu0 %vm253_vm0, %v482_v32 }
 0x3ba   : > { %v508_v37 = vpop.f32.mrf.mxu0 }
 0x3bb   : > { %v509_v38 = vadd.f32 %v508_v37, %v483_v36 }
 0x3bd   : > { %889 = vtanh.f32 %v509_v38 }
 0x3c2   : > { %v510_v39 = vpop.f32.mrf.mxu0 }
 0x3c3   : > { %v890_v40 = vpop.eup %889 }
 0x3c4   : > { %v513_v41 = vsel %vm253_vm0, %v890_v40, -inf }
 0x3c5   : > { %v514_v42 = vrot.slane %v513_v41, 4 }
 0x3c7   : > { %v515_v43 = vmax.f32 %v513_v41, %v514_v42 }
 0x3c9   : > { %v516_v44 = vrot.slane %v515_v43, 2 }
 0x3cb   : > { %v517_v45 = vmax.f32 %v515_v43, %v516_v44 }
 0x3cd   : > { %v518_v46 = vrot.slane %v517_v45, 1 }
 0x3cf   : > { %v519_v47 = vmax.f32 %v517_v45, %v518_v46 }
 0x3d1   : > { %v525_v48 = vpack.c.bf16 %v519_v47, %v519_v47 }
 0x3d3   : > { %791 = vmatmul.msk.bf16.vlgmr.msrb.gmra.mxu1 %vm253_vm0, %v525_v48 }
 0x450   : > { %v553_v50 = vpop.f32.mrf.mxu1 }
 0x451   : > { %v554_v51 = vadd.f32 %v553_v50, %v539_v49 }
 0x453   : > { %891 = vtanh.f32 %v554_v51 }
 0x458   : > { %v555_v52 = vpop.f32.mrf.mxu1 }
 0x459   : > { %v892_v53 = vpop.eup %891 }
 0x45a   : > { %v563_v54 = vpack.c.bf16 %v892_v53, %v892_v53 }
 0x45c   : > { %800 = vmatmul.msk.bf16.vlgmr.msrb.gmra.mxu2 %vm253_vm0, %v563_v54 }
 0x4df   : > { %v590_v56 = vpop.f32.mrf.mxu2 }
 0x4e0   : > { %v591_v57 = vadd.f32 %v590_v56, %v576_v55 }
 0x4e2   : > { %594 = vxpose.xlu0.b32.start.end [1/1] (short) (narrow) %v591_v57, 8 }
 0x4e7   : > { %v592_v58 = vpop.f32.mrf.mxu2 }
 0x586   : > { %v610_v59 = vpop.trf.xlu0 }
 0x587   : > { %627 = vst.msk [vmem:[%s219_s27] sm:$0x1] %vm626_vm1, %v610_v59 }
 0x588 PF: > { %p14_p4 = scmp.ge.s32.totalorder %s1096_s4, 4   ;;  %s1191_s12 = smov %s1013_s13 }
 0x589   : > { %s1192_s13 = smov %s1017_s14  ;;  %s1193_s14 = smov %s1106_s8 }
 0x58a   : > { %s1194_s15 = smov %s1096_s4  ;;  %16 = sbr.rel (!%p14_p4) target bundleno = 4 (0x4), region = 87 }
 0x58f   :  { %645 = vsyncpa [#allocation3], 1 }
 0x590   :  { %647 = vsyncpa [#allocation3 + $0x1], 1 }
 0x591   :  { %648 = vsyncpa [#allocation5], 1 }

// kernel: tpu_custom_call.1
= control target key start
LH: loop header
LB: loop body
LE: loop exit
PB: predicated region body
PF: predicated region fallthrough
CT: control target
= control target key end

     0   :  { %8 = vsyncpa [#allocation3], 0  ;;  %s1184_s0 = inlined_call_operand.hbm [shape: bf16[2,32,32], index: 0, kind: input, shape index: {}]   ;;  %s1185_s1 = inlined_call_operand.hbm [shape: bf16[8,32,32], index: 1, kind: input, shape index: {}]   ;;  %s1186_s2 = inlined_call_operand.hbm [shape: f32[8,32], index: 2, kind: input, shape index: {}]   ;;  %s1187_s3 = inlined_call_operand.vmem [shape: f32[2,1,1], index: 3, kind: output, shape index: {}]  }
   0x1   :  { %10 = vsyncpa [#allocation3 + $0x1], 0 }
   0x2   :  { %11 = vsyncpa [#allocation5], 0  ;;  %s1047_s12 = smov 0   ;;  %s1049_s13 = smov 0  }
   0x3   :  { %s1051_s14 = smov 0   ;;  %s1053_s15 = smov 0  }
   0x4 LB: > { %s1066_s16 = sadd.s32 4294967295, %s1021_s15   ;;  %p37_p0 = scmp.ne.s32.totalorder %s1013_s13, %s1009_s12  ;;  %s1021_s15 = sphi %s1053_s15, %s1194_s15   ;;  %s1017_s14 = sphi %s1051_s14, %s1193_s14   ;;  %s1013_s13 = sphi %s1049_s13, %s1192_s13   ;;  %s1009_s12 = sphi %s1047_s12, %s1191_s12  }
   0x5   : > { %p38_p1 = scmp.eq.s32.totalorder %s1066_s16, 0  ;;  %p707_p2 = scmp.ge.s32.totalorder %s1021_s15, 1 }
   0x6   : > { %p116_p3 = scmp.lt.s32.totalorder %s1021_s15, 3  ;;  %s127_s20 = sshll.u32 %s1185_s1, 4  ;;  %s128_s20 = int_to_ptr.hbm [resolvable:$true] %s127_s20 }
   0x7   : > { %p1074_p4 = por %p38_p1, %p37_p0  ;;  %s1023_s22 = smov [#allocation4]  }
   0x8   : > { %p1081_p5 = pnand %p707_p2, %p116_p3  ;;  %s129_s23 = sshll.u32 %s1023_s22, 4  ;;  %s130_s23 = int_to_ptr.vmem [resolvable:$true] %s129_s23 }
   0x9   : > { %s142_s26 = sshll.u32 %s1186_s2, 4  ;;  %s1024_s27 = smov 64   ;;  %s143_s26 = int_to_ptr.hbm [resolvable:$true] %s142_s26 }
   0xa   : > { %p832_p6 = pneg %p1081_p5  ;;  %s1025_s28 = smov 4  }
   0xb   : > { %s1026_s29 = smov [#allocation6]   ;;  %s1096_s4 = sadd.s32 1, %s1021_s15  }
   0xc   : > { %p833_p7 = pnand %p832_p6, %p38_p1  ;;  %s144_s30 = sshll.u32 %s1026_s29, 4  ;;  %s145_s30 = int_to_ptr.vmem [resolvable:$true] %s144_s30 }
   0xd   : > { %s24_s5 = sadd.s32 1, %s1017_s14  ;;  %s21_s6 = ssub.s32 %s1021_s15, %s1096_s4 }
   0xe   : > { %835 = dma.hbm_to_vmem [thread:$0]  (!%p833_p7), %s128_s20, 2048, %s130_s23, [#allocation5], %s1024_s27, %s1024_s27, %s1025_s28  }
   0xf   : > { %838 = dma.hbm_to_vmem [thread:$0]  (!%p833_p7), %s143_s26, 128, %s145_s30, [#allocation5]  }
  0x10   : > { %p31_p8 = scmp.ne.s32.totalorder %s1017_s14, %s1013_s13  ;;  %p22_p9 = scmp.eq.s32.totalorder %s21_s6, 0 }
  0x11   : > { %p32_p10 = scmp.eq.s32.totalorder %s1021_s15, 0  ;;  %s155_s7 = sand.u32 1, %s1017_s14  }
  0x12   : > { %s1106_s8 = scalar_select %p22_p9, %s1017_s14, %s24_s5  }
  0x13   : > { %p33_p11 = por %p32_p10, %p31_p8  ;;  %p845_p12 = scmp.lt.s32.totalorder %s1021_s15, 2 }
  0x14   : > { %s711_s9 = sshll.u32 %s155_s7, 4  ;;  %s803_s10 = sshll.u32 %s1021_s15, 4 }
  0x15   : > { %s164_s18 = scalar_lea.hbm %s1184_s0, %s803_s10  ;;  %s159_s20 = scalar_lea.vmem [#allocation2], %s711_s9 }
  0x16   : > { %s165_s19 = sshll.u32 %s164_s18, 4  ;;  %s167_s22 = sshll.u32 %s159_s20, 4  ;;  %s166_s19 = int_to_ptr.hbm [resolvable:$true] %s165_s19  ;;  %s168_s22 = int_to_ptr.vmem [resolvable:$true] %s167_s22 }
  0x17   : > { %p1113_p13 = pnand %p845_p12, %p33_p11  ;;  %s156_s24 = scalar_lea.sflag [#allocation3], %s155_s7 }
  0x18   : > { %s953_s25 = sshra.s32 %s166_s19, 4  ;;  %s960_s30 = scalar_lea.hbm %s1184_s0, 32  ;;  %s954_s25 = int_to_ptr.hbm [resolvable:$true] %s953_s25 }
  0x19   : > { %s955_s26 = scalar_lea.hbm %s954_s25, 16  ;;  %p957_p2 = pneg %p1113_p13 }
  0x1a   : > { %p956_p0 = scmp.ne.s32.totalorder %s954_s25, %s955_s26  ;;  %p961_p7 = scmp.lt.s32.totalorder %s954_s25, %s1184_s0 }
  0x1b   : > { %p962_p8 = scmp.lt.s32.totalorder %s960_s30, %s955_s26 }
  0x1c   : > { %p958_p3 = pnand %p957_p2, %p956_p0 }
  0x1d   : > { %p963_p9 = por %p962_p8, %p961_p7 }
  0x1e   : > { %p959_p6 = pneg %p958_p3 }
  0x20   : > { %p964_p10 = pnand %p963_p9, %p959_p6 }
  0x22   : > { %967 = shalt.err (!%p964_p10)
}
  0x23   : > { %842 = dma.hbm_to_vmem [thread:$0]  (!%p1113_p13), %s166_s19, 256, %s168_s22, %s156_s24, %s1024_s27, %s1024_s27, %s1025_s28  }
  0x24   : > { %179 = sbr.rel (%p1081_p5) target bundleno = 1416 (0x588), region = 32  ;;  %s181_s7 = sand.u32 (!%p1081_p5), 1, %s1013_s13  }
  0x25   : > { %s715_s9 = sshll.u32 (!%p1081_p5), %s181_s7, 4  ;;  %s182_s10 = scalar_lea.sflag (!%p1081_p5), [#allocation3], %s181_s7 }
  0x26   : > { %s185_s11 = scalar_lea.vmem (!%p1081_p5), [#allocation2], %s715_s9 }
  0x29   : > { %1000 = dma.done.wait (%p1074_p4), %s182_s10, 256  }
  0x2a   : > { %1002 = vsyncadd (%p1074_p4), %s182_s10, 4294967040 }
  0x2b   : > { %1004 = dma.done.wait (%p38_p1), [#allocation5], 2176  }
  0x2c   : > { %1006 = vsyncadd (%p38_p1), [#allocation5], 4294965120  ;;  %v807_v0 = vld [vmem:[#allocation4 + $0x8] sm:$0xff]  ;;  %v806_v1 = vld [vmem:[#allocation4] sm:$0xff]  ;;  %vm253_vm0 = vcmask 261120   ;;  %p217_p1 = scmp.lt.s32.totalorder %s1066_s16, 1 }
  0x2d   : > { %266 = vmatpush.bf16.msra.mxu0 %v807_v0  ;;  %v804_v2 = vld [vmem:[%s185_s11] sm:$0xff]  ;;  %v805_v3 = vld [vmem:[%s185_s11 + $0x8] sm:$0xff]  ;;  %vm626_vm1 = vcmask 0  }
  0x2e   : > { %v809_v4 = vld [vmem:[#allocation4 + $0x18] sm:$0xff]  ;;  %v808_v5 = vld [vmem:[#allocation4 + $0x10] sm:$0xff]  ;;  %v1143_v6 = vld [vmem:[#allocation6] sm:$0xff]  ;;  %s1196_s16 = smov (!%p217_p1, %s1066_s16), 1 }
  0x2f   : > { %315 = vmatpush.bf16.msra.mxu1 %v809_v4  ;;  %v230_v8 = vperm.slane %v1143_v6, 0  ;;  %v811_v22 = vld [vmem:[#allocation4 + $0x28] sm:$0xff]  ;;  %v810_v23 = vld [vmem:[#allocation4 + $0x20] sm:$0xff]  ;;  %v290_v25 = vperm.slane %v1143_v6, 1  ;;  %v813_v40 = vld [vmem:[#allocation4 + $0x38] sm:$0xff]  ;;  %v339_v44 = vperm.slane %v1143_v6, 2  ;;  %s219_s27 = scalar_lea.vmem %s1187_s3, %s1196_s16 }
  0x30   : > { %364 = vmatpush.bf16.msra.mxu2 %v811_v22  ;;  %417 = vmatpush.bf16.msra.mxu3 %v813_v40  ;;  %v812_v42 = vld [vmem:[#allocation4 + $0x30] sm:$0xff]  ;;  %v815_v63 = vld [vmem:[#allocation4 + $0x48] sm:$0xff]  ;;  %v814_v0 = vld [vmem:[#allocation4 + $0x40] sm:$0xff] }
  0x31   : > { %267 = vmatpush.bf16.msra.mxu0 %v806_v1  ;;  %v817_v1 = vld [vmem:[#allocation4 + $0x58] sm:$0xff] }
  0x33   : > { %316 = vmatpush.bf16.msra.mxu1 %v808_v5 }
  0x34   : > { %734 = vmatmul.msk.bf16.vlgmr.msra.gmra.mxu0 %vm253_vm0, %v804_v2  ;;  %365 = vmatpush.bf16.msra.mxu2 %v810_v23  ;;  %v395_v2 = vperm.slane %v1143_v6, 3 }
  0x35   : > { %418 = vmatpush.bf16.msra.mxu3 %v812_v42  ;;  %505 = vmatpush.bf16.msrb.mxu0 %v817_v1 }
  0x39   : > { %461 = vmatpush.bf16.msrb.mxu3 %v815_v63 }
  0x3d   : > { %462 = vmatpush.bf16.msrb.mxu3 %v814_v0 }
  0x44   : > { %735 = vmatmul.msk.bf16.gmra.mxu0 %vm253_vm0, %v805_v3 }
  0xb1   : > { %v269_v7 = vpop.f32.mrf.mxu0 }
  0xb2   : > { %v270_v9 = vadd.f32 %v269_v7, %v230_v8 }
  0xb4   : > { %v279_v12 = vmax.f32 %v270_v9, 0.0 }
  0xb9   : > { %v271_v10 = vpop.f32.mrf.mxu0 }
  0xba   : > { %v272_v11 = vadd.f32 %v271_v10, %v230_v8 }
  0xbc   : > { %v280_v13 = vmax.f32 %v272_v11, 0.0 }
  0xbe   : > { %v288_v14 = vpack.c.bf16 %v280_v13, %v279_v12 }
  0xc0   : > { %744 = vmatmul.msk.bf16.vlgmr.msra.gmra.mxu1 %vm253_vm0, %v288_v14 }
  0xc1   : > { %v274_v15 = vpop.f32.mrf.mxu0 }
  0xc2   : > { %v275_v16 = vadd.f32 %v274_v15, %v230_v8 }
  0xc4   : > { %v281_v19 = vmax.f32 %v275_v16, 0.0 }
  0xc9   : > { %v276_v17 = vpop.f32.mrf.mxu0 }
  0xca   : > { %v277_v18 = vadd.f32 %v276_v17, %v230_v8  ;;  %v816_v17 = vld [vmem:[#allocation4 + $0x50] sm:$0xff] }
  0xcb   : > { %506 = vmatpush.bf16.msrb.mxu0 %v816_v17 }
  0xcc   : > { %v282_v20 = vmax.f32 %v277_v18, 0.0  ;;  %v819_v18 = vld [vmem:[#allocation4 + $0x68] sm:$0xff] }
  0xcd   : > { %550 = vmatpush.bf16.msrb.mxu1 %v819_v18 }
  0xce   : > { %v289_v21 = vpack.c.bf16 %v282_v20, %v281_v19  ;;  %v439_v19 = vperm.slane %v1143_v6, 4 }
  0xd0   : > { %745 = vmatmul.msk.bf16.gmra.mxu1 %vm253_vm0, %v289_v21 }
 0x13d   : > { %v318_v24 = vpop.f32.mrf.mxu1 }
 0x13e   : > { %v319_v26 = vadd.f32 %v318_v24, %v290_v25 }
 0x140   : > { %v328_v29 = vmax.f32 %v319_v26, 0.0 }
 0x145   : > { %v320_v27 = vpop.f32.mrf.mxu1 }
 0x146   : > { %v321_v28 = vadd.f32 %v320_v27, %v290_v25 }
 0x148   : > { %v329_v30 = vmax.f32 %v321_v28, 0.0 }
 0x14a   : > { %v337_v31 = vpack.c.bf16 %v329_v30, %v328_v29 }
 0x14c   : > { %754 = vmatmul.msk.bf16.vlgmr.msra.gmra.mxu2 %vm253_vm0, %v337_v31 }
 0x14d   : > { %v323_v32 = vpop.f32.mrf.mxu1 }
 0x14e   : > { %v324_v33 = vadd.f32 %v323_v32, %v290_v25 }
 0x150   : > { %v330_v36 = vmax.f32 %v324_v33, 0.0  ;;  %v818_v33 = vld [vmem:[#allocation4 + $0x60] sm:$0xff] }
 0x151   : > { %551 = vmatpush.bf16.msrb.mxu1 %v818_v33 }
 0x155   : > { %v325_v34 = vpop.f32.mrf.mxu1 }
 0x156   : > { %v326_v35 = vadd.f32 %v325_v34, %v290_v25  ;;  %v821_v34 = vld [vmem:[#allocation4 + $0x78] sm:$0xff] }
 0x157   : > { %587 = vmatpush.bf16.msrb.mxu2 %v821_v34 }
 0x158   : > { %v331_v37 = vmax.f32 %v326_v35, 0.0  ;;  %v820_v35 = vld [vmem:[#allocation4 + $0x70] sm:$0xff] }
 0x15a   : > { %v338_v38 = vpack.c.bf16 %v331_v37, %v330_v36  ;;  %v483_v36 = vperm.slane %v1143_v6, 5 }
 0x15b   : > { %588 = vmatpush.bf16.msrb.mxu2 %v820_v35 }
 0x15c   : > { %755 = vmatmul.msk.bf16.gmra.mxu2 %vm253_vm0, %v338_v38 }
 0x1cf   : > { %v367_v39 = vpop.f32.mrf.mxu2 }
 0x1d0   : > { %v368_v47 = vadd.f32 %v367_v39, %v339_v44 }
 0x1d7   : > { %v369_v41 = vpop.f32.mrf.mxu2 }
 0x1d8   : > { %v370_v45 = vadd.f32 %v369_v41, %v339_v44 }
 0x1da   : > { %v377_v50 = vadd.f32 %v370_v45, %v368_v47 }
 0x1df   : > { %v372_v43 = vpop.f32.mrf.mxu2 }
 0x1e0   : > { %v373_v48 = vadd.f32 %v372_v43, %v339_v44 }
 0x1e7   : > { %v374_v46 = vpop.f32.mrf.mxu2 }
 0x1e8   : > { %v375_v49 = vadd.f32 %v374_v46, %v339_v44 }
 0x1ea   : > { %v378_v51 = vadd.f32 %v375_v49, %v373_v48  ;;  %v539_v49 = vrot.slane %v1143_v6, 6 }
 0x1ec   : > { %v379_v52 = vadd.f32 %v378_v51, %v377_v50 }
 0x1ee   : > { %v380_v53 = vmul.f32 0.25, %v379_v52 }
 0x1f0   : > { %v381_v54 = vsel %vm253_vm0, %v380_v53, -inf }
 0x1f1   : > { %v382_v55 = vrot.slane %v381_v54, 4 }
 0x1f3   : > { %v383_v56 = vmax.f32 %v381_v54, %v382_v55  ;;  %v576_v55 = vrot.slane %v1143_v6, 7 }
 0x1f5   : > { %v384_v57 = vrot.slane %v383_v56, 2 }
 0x1f7   : > { %v385_v58 = vmax.f32 %v383_v56, %v384_v57 }
 0x1f9   : > { %v386_v59 = vrot.slane %v385_v58, 1 }
 0x1fb   : > { %v387_v60 = vmax.f32 %v385_v58, %v386_v59 }
 0x1fd   : > { %v388_v61 = vsub.f32 %v380_v53, %v387_v60 }
 0x1ff   : > { %v394_v62 = vpack.c.bf16 %v388_v61, %v388_v61 }
 0x201   : > { %764 = vmatmul.msk.bf16.vlgmr.msra.gmra.mxu3 %vm253_vm0, %v394_v62 }
 0x284   : > { %v420_v3 = vpop.f32.mrf.mxu3 }
 0x285   : > { %v421_v4 = vadd.f32 %v420_v3, %v395_v2 }
 0x287   : > { %885 = vtanh.f32 %v421_v4 }
 0x28c   : > { %v422_v5 = vpop.f32.mrf.mxu3 }
 0x28d   : > { %v886_v7 = vpop.eup %885 }
 0x28e   : > { %v425_v8 = vsel %vm253_vm0, %v886_v7, -inf }
 0x28f   : > { %v426_v9 = vrot.slane %v425_v8, 4 }
 0x291   : > { %v427_v10 = vmax.f32 %v425_v8, %v426_v9 }
 0x293   : > { %v428_v11 = vrot.slane %v427_v10, 2 }
 0x295   : > { %v429_v12 = vmax.f32 %v427_v10, %v428_v11 }
 0x297   : > { %v430_v13 = vrot.slane %v429_v12, 1 }
 0x299   : > { %v431_v14 = vmax.f32 %v429_v12, %v430_v13 }
 0x29b   : > { %v432_v15 = vsub.f32 %v886_v7, %v431_v14 }
 0x29d   : > { %v438_v16 = vpack.c.bf16 %v432_v15, %v432_v15 }
 0x29f   : > { %773 = vmatmul.msk.bf16.vlgmr.msrb.gmra.mxu3 %vm253_vm0, %v438_v16 }
 0x322   : > { %v464_v20 = vpop.f32.mrf.mxu3 }
 0x323   : > { %v465_v21 = vadd.f32 %v464_v20, %v439_v19 }
 0x325   : > { %887 = vtanh.f32 %v465_v21 }
 0x32a   : > { %v466_v22 = vpop.f32.mrf.mxu3 }
 0x32b   : > { %v888_v23 = vpop.eup %887 }
 0x32c   : > { %v469_v24 = vsel %vm253_vm0, %v888_v23, -inf }
 0x32d   : > { %v470_v25 = vrot.slane %v469_v24, 4 }
 0x32f   : > { %v471_v26 = vmax.f32 %v469_v24, %v470_v25 }
 0x331   : > { %v472_v27 = vrot.slane %v471_v26, 2 }
 0x333   : > { %v473_v28 = vmax.f32 %v471_v26, %v472_v27 }
 0x335   : > { %v474_v29 = vrot.slane %v473_v28, 1 }
 0x337   : > { %v475_v30 = vmax.f32 %v473_v28, %v474_v29 }
 0x339   : > { %v476_v31 = vsub.f32 %v888_v23, %v475_v30 }
 0x33b   : > { %v482_v32 = vpack.c.bf16 %v476_v31, %v476_v31 }
 0x33d   : > { %782 = vmatmul.msk.bf16.vlgmr.msrb.gmra.mxu0 %vm253_vm0, %v482_v32 }
 0x3ba   : > { %v508_v37 = vpop.f32.mrf.mxu0 }
 0x3bb   : > { %v509_v38 = vadd.f32 %v508_v37, %v483_v36 }
 0x3bd   : > { %889 = vtanh.f32 %v509_v38 }
 0x3c2   : > { %v510_v39 = vpop.f32.mrf.mxu0 }
 0x3c3   : > { %v890_v40 = vpop.eup %889 }
 0x3c4   : > { %v513_v41 = vsel %vm253_vm0, %v890_v40, -inf }
 0x3c5   : > { %v514_v42 = vrot.slane %v513_v41, 4 }
 0x3c7   : > { %v515_v43 = vmax.f32 %v513_v41, %v514_v42 }
 0x3c9   : > { %v516_v44 = vrot.slane %v515_v43, 2 }
 0x3cb   : > { %v517_v45 = vmax.f32 %v515_v43, %v516_v44 }
 0x3cd   : > { %v518_v46 = vrot.slane %v517_v45, 1 }
 0x3cf   : > { %v519_v47 = vmax.f32 %v517_v45, %v518_v46 }
 0x3d1   : > { %v525_v48 = vpack.c.bf16 %v519_v47, %v519_v47 }
 0x3d3   : > { %791 = vmatmul.msk.bf16.vlgmr.msrb.gmra.mxu1 %vm253_vm0, %v525_v48 }
 0x450   : > { %v553_v50 = vpop.f32.mrf.mxu1 }
 0x451   : > { %v554_v51 = vadd.f32 %v553_v50, %v539_v49 }
 0x453   : > { %891 = vtanh.f32 %v554_v51 }
 0x458   : > { %v555_v52 = vpop.f32.mrf.mxu1 }
 0x459   : > { %v892_v53 = vpop.eup %891 }
 0x45a   : > { %v563_v54 = vpack.c.bf16 %v892_v53, %v892_v53 }
 0x45c   : > { %800 = vmatmul.msk.bf16.vlgmr.msrb.gmra.mxu2 %vm253_vm0, %v563_v54 }
 0x4df   : > { %v590_v56 = vpop.f32.mrf.mxu2 }
 0x4e0   : > { %v591_v57 = vadd.f32 %v590_v56, %v576_v55 }
 0x4e2   : > { %594 = vxpose.xlu0.b32.start.end [1/1] (short) (narrow) %v591_v57, 8 }
 0x4e7   : > { %v592_v58 = vpop.f32.mrf.mxu2 }
 0x586   : > { %v610_v59 = vpop.trf.xlu0 }
 0x587   : > { %627 = vst.msk [vmem:[%s219_s27] sm:$0x1] %vm626_vm1, %v610_v59 }
 0x588 PF: > { %p14_p4 = scmp.ge.s32.totalorder %s1096_s4, 4   ;;  %s1191_s12 = smov %s1013_s13 }
 0x589   : > { %s1192_s13 = smov %s1017_s14  ;;  %s1193_s14 = smov %s1106_s8 }
 0x58a   : > { %s1194_s15 = smov %s1096_s4  ;;  %16 = sbr.rel (!%p14_p4) target bundleno = 4 (0x4), region = 87 }
 0x58f   :  { %645 = vsyncpa [#allocation3], 1 }
 0x590   :  { %647 = vsyncpa [#allocation3 + $0x1], 1 }
 0x591   :  { %648 = vsyncpa [#allocation5], 1 }

</bundles_post_ra>
